<compile_context>
chip_gen: v5e
topology: v5e:2x2
jax: 0.10.0
libtpu: 0.0.40
codegen_flags: <defaults>
</compile_context>

<pallas_src>
import jax
import jax.numpy as jnp
from jax.experimental import pallas as pl
from jax.experimental.pallas import tpu as pltpu


def _pad_to_size_kernel(x_ref, o_ref):
    # x_ref: (TB, H, W) input planes; o_ref: (TB, S, S) padded output planes.
    tb, h, w = x_ref.shape
    s = o_ref.shape[-1]

    x = x_ref[...]
    # Lane-pad the W axis to full output width in-register so the store of
    # the copied region is full-lane-width (single write per element).
    if w < s:
        x = jnp.concatenate(
            [x, jnp.zeros((tb, h, s - w), dtype=x.dtype)], axis=-1)
    o_ref[:, :h, :] = x

    # Remaining rows are pure zero fill — written exactly once.
    if h < s:
        o_ref[:, h:, :] = jnp.zeros((tb, s - h, s), dtype=o_ref.dtype)


def _choose_tb(b: int, out_plane_bytes: int,
               target_block_bytes: int = 2 << 20) -> int:
    """Largest divisor of b whose output block stays under the target size,
    while keeping at least 2 grid steps (so both v7x TensorCores get work)."""
    best = 1
    for tb in range(1, b + 1):
        if b % tb:
            continue
        if b >= 2 and b // tb < 2:
            continue
        if tb * out_plane_bytes <= target_block_bytes:
            best = max(best, tb)
    return best


def pad_to_size(image: jax.Array, size: int) -> jax.Array:
    """Zero-pad the last two dims of `image` (NCHW) to (size, size)."""
    n, c, h, w = image.shape
    assert size >= h and size >= w, "PadToSize only supports growing H/W"

    b = n * c
    x = image.reshape(b, h, w)

    itemsize = jnp.dtype(image.dtype).itemsize
    in_plane_bytes = h * w * itemsize
    out_plane_bytes = size * size * itemsize
    tb = _choose_tb(b, out_plane_bytes)
    grid = (b // tb,)

    # Double-buffered (in + out) footprint with headroom, capped well below
    # v7x's 64 MiB physical VMEM.
    vmem_bytes = min(4 * tb * (in_plane_bytes + out_plane_bytes) + (1 << 20),
                     32 << 20)

    out = pl.pallas_call(
        _pad_to_size_kernel,
        out_shape=jax.ShapeDtypeStruct((b, size, size), image.dtype),
        grid_spec=pl.GridSpec(
            grid=grid,
            # Blocks cover the full (H, W) / (S, S) extents of their arrays,
            # so the (8, 128) divisibility rule does not apply.
            in_specs=[pl.BlockSpec((tb, h, w), lambda i: (i, 0, 0))],
            out_specs=pl.BlockSpec((tb, size, size), lambda i: (i, 0, 0)),
        ),
        compiler_params=pltpu.CompilerParams(
            dimension_semantics=("parallel",),
            vmem_limit_bytes=vmem_bytes,
        ),
        cost_estimate=pl.CostEstimate(
            flops=0,
            transcendentals=0,
            bytes_accessed=b * (h * w + size * size) * itemsize,
        ),
    )(x)

    return out.reshape(n, c, size, size)


if __name__ == "__main__":
    key = jax.random.PRNGKey(0)
    N, C, H, W = 2, 4, 16, 16
    SIZE = 32  # target spatial size (PadToSize(size=32))

    image = jax.random.normal(key, (N, C, H, W), dtype=jnp.float32)

    out = pad_to_size(image, SIZE)
    out = jax.block_until_ready(out)

    # Reference check against plain JAX padding.
    ref = jnp.pad(image, ((0, 0), (0, 0), (0, SIZE - H), (0, SIZE - W)))
    assert out.shape == (N, C, SIZE, SIZE), out.shape
    assert out.dtype == image.dtype
    assert jnp.array_equal(out, ref), "mismatch vs. reference pad"

    print("KERNEL_OK")
</pallas_src>

<mosaic_0001>
module attributes {stable_mosaic.version = 11 : i64} {
  func.func @_pad_to_size_kernel(%arg0: i32, %arg1: memref<4x16x16xf32, #tpu.memory_space<vmem>>, %arg2: memref<4x32x32xf32, #tpu.memory_space<vmem>>) attributes {dimension_semantics = [#tpu.dimension_semantics<parallel>], iteration_bounds = array<i64: 2>, scalar_prefetch = 0 : i64, scratch_operands = 0 : i64, tpu.core_type = #tpu.core_type<tc>, window_params = [{transform_indices = @transform_0, window_bounds = array<i64: 4, 16, 16>}, {transform_indices = @transform_1, window_bounds = array<i64: 4, 32, 32>}]} {
    %c0 = arith.constant 0 : index
    %c0_0 = arith.constant 0 : index
    %c0_1 = arith.constant 0 : index
    %0 = vector.load %arg1[%c0, %c0_0, %c0_1] : memref<4x16x16xf32, #tpu.memory_space<vmem>>, vector<4x16x16xf32>
    %cst = arith.constant 0.000000e+00 : f32
    %1 = vector.broadcast %cst : f32 to vector<4x16x16xf32>
    %2 = tpu.concatenate %0, %1 in 2 : vector<4x16x16xf32>, vector<4x16x16xf32> -> vector<4x16x32xf32>
    %c0_2 = arith.constant 0 : index
    %c0_3 = arith.constant 0 : index
    %c0_4 = arith.constant 0 : index
    %3 = vector.load %arg2[%c0_2, %c0_3, %c0_4] : memref<4x32x32xf32, #tpu.memory_space<vmem>>, vector<4x16x32xf32>
    tpu.vector_store %arg2[%c0_2, %c0_3, %c0_4], %2 {strides = array<i32>} : memref<4x32x32xf32, #tpu.memory_space<vmem>>, vector<4x16x32xf32>,
    %cst_5 = arith.constant 0.000000e+00 : f32
    %4 = vector.broadcast %cst_5 : f32 to vector<4x16x32xf32>
    %c0_6 = arith.constant 0 : index
    %c16 = arith.constant 16 : index
    %c0_7 = arith.constant 0 : index
    %5 = vector.load %arg2[%c0_6, %c16, %c0_7] : memref<4x32x32xf32, #tpu.memory_space<vmem>>, vector<4x16x32xf32>
    tpu.vector_store %arg2[%c0_6, %c16, %c0_7], %4 {strides = array<i32>} : memref<4x32x32xf32, #tpu.memory_space<vmem>>, vector<4x16x32xf32>,
    return
  }
  func.func @transform_0(%arg0: i32) -> (i32, i32, i32) {
    %c0_i32 = arith.constant 0 : i32
    %c0_i32_0 = arith.constant 0 : i32
    %c0_i32_1 = arith.constant 0 : i32
    return %arg0, %c0_i32, %c0_i32_0 : i32, i32, i32
  }
  func.func @transform_1(%arg0: i32) -> (i32, i32, i32) {
    %c0_i32 = arith.constant 0 : i32
    %c0_i32_0 = arith.constant 0 : i32
    %c0_i32_1 = arith.constant 0 : i32
    return %arg0, %c0_i32, %c0_i32_0 : i32, i32, i32
  }
}

</mosaic_0001>

<bundles_post_ra>
// kernel: tpu_custom_call.1
= control target key start
LH: loop header
LB: loop body
LE: loop exit
PB: predicated region body
PF: predicated region fallthrough
CT: control target
= control target key end

     0   :  { %6 = vsyncpa [#allocation3], 0  ;;  %s619_s0 = inlined_call_operand.hbm [shape: f32[8,16,16], index: 0, kind: input, shape index: {}]   ;;  %s620_s1 = inlined_call_operand.hbm [shape: f32[8,32,32], index: 1, kind: output, shape index: {}]  }
   0x1   :  { %8 = vsyncpa [#allocation3 + $0x1], 0 }
   0x2   :  { %9 = vsyncpa [#allocation4], 0 }
   0x3   :  { %11 = vsyncpa [#allocation4 + $0x1], 0  ;;  %s448_s6 = smov 0   ;;  %s450_s7 = smov 0  }
   0x4   :  { %s452_s8 = smov 0   ;;  %s454_s9 = smov 0  }
   0x5 LB: > { %s469_s10 = sadd.s32 4294967295, %s431_s9   ;;  %s264_s11 = sadd.s32 4294967294, %s431_s9   ;;  %s431_s9 = sphi %s454_s9, %s630_s9   ;;  %s427_s8 = sphi %s452_s8, %s629_s8   ;;  %s423_s7 = sphi %s450_s7, %s628_s7   ;;  %s419_s6 = sphi %s448_s6, %s627_s6  }
   0x6   : > { %s473_s12 = sadd.s32 1, %s431_s9   ;;  %s24_s13 = sadd.s32 1, %s427_s8 }
   0x7   : > { %s21_s14 = ssub.s32 %s431_s9, %s473_s12  ;;  %p31_p0 = scmp.ne.s32.totalorder %s427_s8, %s423_s7 }
   0x8   : > { %p22_p1 = scmp.eq.s32.totalorder %s21_s14, 0  ;;  %p32_p2 = scmp.eq.s32.totalorder %s431_s9, 0 }
   0x9   : > { %p37_p3 = scmp.ne.s32.totalorder %s423_s7, %s419_s6  ;;  %p38_p4 = scmp.eq.s32.totalorder %s469_s10, 0 }
   0xa   : > { %s485_s15 = scalar_select %p22_p1, %s427_s8, %s24_s13  }
   0xb   : > { %p487_p5 = por %p32_p2, %p31_p0  ;;  %p491_p6 = por %p38_p4, %p37_p3 }
   0xc   : > { %p61_p7 = scmp.eq.s32.totalorder %s469_s10, 1  ;;  %p67_p8 = scmp.eq.s32.totalorder %s264_s11, 1 }
   0xd   : > { %p296_p10 = scmp.lt.s32.totalorder %s431_s9, 2  ;;  %s87_s20 = sand.u32 1, %s427_s8  }
   0xe   : > { %p498_p11 = por %p61_p7, %p31_p0  ;;  %p502_p12 = por %p67_p8, %p37_p3 }
   0xf   : > { %s281_s21 = sshll.u32 %s431_s9, 6  ;;  %s267_s22 = sshll.u32 %s87_s20, 6 }
  0x10   : > { %s97_s25 = scalar_lea.hbm %s619_s0, %s281_s21  ;;  %s91_s27 = scalar_lea.vmem [#allocation2], %s267_s22 }
  0x11   : > { %s98_s26 = sshll.u32 %s97_s25, 4  ;;  %s100_s28 = sshll.u32 %s91_s27, 4  ;;  %s99_s26 = int_to_ptr.hbm [resolvable:$true] %s98_s26  ;;  %s101_s28 = int_to_ptr.vmem [resolvable:$true] %s100_s28 }
  0x12   : > { %p513_p13 = pnand %p296_p10, %p487_p5  ;;  %p271_p0 = scmp.ge.s32.totalorder %s431_s9, 1 }
  0x13   : > { %p108_p1 = scmp.lt.s32.totalorder %s431_s9, 3  ;;  %s88_s30 = scalar_lea.sflag [#allocation3], %s87_s20 }
  0x14   : > { %s335_s2 = sshra.s32 %s99_s26, 4  ;;  %p339_p3 = pneg %p513_p13  ;;  %s336_s2 = int_to_ptr.hbm [resolvable:$true] %s335_s2 }
  0x15   : > { %s337_s3 = scalar_lea.hbm %s336_s2, 64  ;;  %s342_s11 = scalar_lea.hbm %s619_s0, 128 }
  0x16   : > { %p338_p2 = scmp.ne.s32.totalorder %s336_s2, %s337_s3  ;;  %p343_p5 = scmp.lt.s32.totalorder %s336_s2, %s619_s0 }
  0x17   : > { %p344_p8 = scmp.lt.s32.totalorder %s342_s11, %s337_s3 }
  0x18   : > { %p340_p4 = pnand %p339_p3, %p338_p2 }
  0x19   : > { %p345_p10 = por %p344_p8, %p343_p5 }
  0x1a   : > { %p341_p7 = pneg %p340_p4 }
  0x1c   : > { %p346_p9 = pnand %p345_p10, %p341_p7 }
  0x1e   : > { %349 = shalt.err (!%p346_p9)
}
  0x1f   : > { %s433_s16 = smov 128   ;;  %s434_s20 = smov 8  }
  0x20   : > { %291 = dma.hbm_to_vmem [thread:$0]  (!%p513_p13), %s99_s26, 1024, %s101_s28, %s88_s30, %s433_s16, %s433_s16, %s434_s20  }
  0x21   : > { %p109_p2 = pnand %p271_p0, %p108_p1 }
  0x22   : > { %s534_s21 = sand.u32 (!%p109_p2), 1, %s423_s7  }
  0x23   : > { %112 = sbr.rel (%p109_p2) target bundleno = 62 (0x3e), region = 24  ;;  %s272_s22 = sshll.u32 (!%p109_p2), %s534_s21, 6 }
  0x24   : > { %s115_s23 = scalar_lea.sflag (!%p109_p2), [#allocation3], %s534_s21  ;;  %s118_s24 = scalar_lea.vmem (!%p109_p2), [#allocation2], %s272_s22 }
  0x28   : > { %410 = dma.done.wait (%p491_p6), %s115_s23, 1024  }
  0x29   : > { %412 = vsyncadd (%p491_p6), %s115_s23, 4294966272  ;;  %s273_s25 = sshll.u32 %s534_s21, 7  ;;  %vm157_vm0 = vcmask 261120   ;;  %v435_v0 = vmov 0.0   ;;  %vm148_vm1 = vcmask 130048   ;;  %s283_s17 = sshll.u32 %s469_s10, 7 }
  0x2a   : > { %s543_s26 = scalar_lea.vmem [#allocation5], %s273_s25  ;;  %v140_v1 = vld [vmem:[%s118_s24] sm:$0xff]  ;;  %v141_v2 = vld [vmem:[%s118_s24 + $0x8] sm:$0xff]  ;;  %v142_v3 = vld [vmem:[%s118_s24 + $0x10] sm:$0xff]  ;;  %s187_s28 = scalar_lea.hbm %s620_s1, %s283_s17 }
  0x2b   : > { %166 = vst.msk [vmem:[%s543_s26 + $0x10] sm:$0xff] %vm157_vm0, %v435_v0  ;;  %v149_v4 = vsel %vm148_vm1, %v140_v1, 0.0  ;;  %v150_v5 = vsel %vm148_vm1, %v141_v2, 0.0  ;;  %v151_v6 = vsel %vm148_vm1, %v142_v3, 0.0  ;;  %v143_v7 = vld [vmem:[%s118_s24 + $0x18] sm:$0xff]  ;;  %v144_v8 = vld [vmem:[%s118_s24 + $0x20] sm:$0xff] }
  0x2c   : > { %167 = vst.msk [vmem:[%s543_s26 + $0x18] sm:$0xff] %vm157_vm0, %v435_v0  ;;  %v145_v9 = vld [vmem:[%s118_s24 + $0x28] sm:$0xff]  ;;  %v152_v10 = vsel %vm148_vm1, %v143_v7, 0.0  ;;  %v146_v11 = vld [vmem:[%s118_s24 + $0x30] sm:$0xff]  ;;  %v153_v12 = vsel %vm148_vm1, %v144_v8, 0.0  ;;  %v147_v13 = vld [vmem:[%s118_s24 + $0x38] sm:$0xff] }
  0x2d   : > { %168 = vst.msk [vmem:[%s543_s26 + $0x30] sm:$0xff] %vm157_vm0, %v435_v0  ;;  %v154_v14 = vsel %vm148_vm1, %v145_v9, 0.0  ;;  %v155_v15 = vsel %vm148_vm1, %v146_v11, 0.0  ;;  %s188_s29 = sshll.u32 %s543_s26, 4  ;;  %s190_s30 = sshll.u32 %s187_s28, 4  ;;  %v156_v16 = vsel %vm148_vm1, %v147_v13, 0.0  ;;  %s189_s29 = int_to_ptr.vmem [resolvable:$true] %s188_s29  ;;  %s191_s30 = int_to_ptr.hbm [resolvable:$true] %s190_s30 }
  0x2e   : > { %169 = vst.msk [vmem:[%s543_s26 + $0x38] sm:$0xff] %vm157_vm0, %v435_v0  ;;  %s175_s2 = scalar_lea.sflag [#allocation4], %s534_s21  ;;  %s379_s3 = sshra.s32 %s191_s30, 4  ;;  %s380_s3 = int_to_ptr.hbm [resolvable:$true] %s379_s3 }
  0x2f   : > { %170 = vst.msk [vmem:[%s543_s26 + $0x50] sm:$0xff] %vm157_vm0, %v435_v0  ;;  %s381_s4 = scalar_lea.hbm %s380_s3, 128  ;;  %s385_s13 = scalar_lea.hbm %s620_s1, 256 }
  0x30   : > { %171 = vst.msk [vmem:[%s543_s26 + $0x58] sm:$0xff] %vm157_vm0, %v435_v0  ;;  %p382_p6 = scmp.ne.s32.totalorder %s380_s3, %s381_s4  ;;  %p386_p0 = scmp.lt.s32.totalorder %s380_s3, %s620_s1 }
  0x31   : > { %158 = vst.msk [vmem:[%s543_s26] sm:$0xff] %vm157_vm0, %v149_v4  ;;  %p387_p1 = scmp.lt.s32.totalorder %s385_s13, %s381_s4 }
  0x32   : > { %159 = vst.msk [vmem:[%s543_s26 + $0x8] sm:$0xff] %vm157_vm0, %v150_v5  ;;  %p383_p9 = pnand %p382_p6, %p498_p11 }
  0x33   : > { %160 = vst.msk [vmem:[%s543_s26 + $0x20] sm:$0xff] %vm157_vm0, %v151_v6  ;;  %p388_p3 = por %p387_p1, %p386_p0 }
  0x34   : > { %161 = vst.msk [vmem:[%s543_s26 + $0x28] sm:$0xff] %vm157_vm0, %v152_v10  ;;  %p384_p13 = pneg %p383_p9 }
  0x35   : > { %162 = vst.msk [vmem:[%s543_s26 + $0x40] sm:$0xff] %vm157_vm0, %v153_v12 }
  0x36   : > { %163 = vst.msk [vmem:[%s543_s26 + $0x48] sm:$0xff] %vm157_vm0, %v154_v14  ;;  %p389_p4 = pnand %p388_p3, %p384_p13 }
  0x37   : > { %164 = vst.msk [vmem:[%s543_s26 + $0x60] sm:$0xff] %vm157_vm0, %v155_v15 }
  0x38   : > { %165 = vst.msk [vmem:[%s543_s26 + $0x68] sm:$0xff] %vm157_vm0, %v156_v16 }
  0x39   : > { %172 = vst.msk [vmem:[%s543_s26 + $0x70] sm:$0xff] %vm157_vm0, %v435_v0 }
  0x3a   : > { %173 = vst.msk [vmem:[%s543_s26 + $0x78] sm:$0xff] %vm157_vm0, %v435_v0 }
  0x3b   : > { %392 = shalt.err (!%p389_p4)
}
  0x3c   : > { %s436_s20 = smov 128   ;;  %s437_s21 = smov 8  }
  0x3d   : > { %286 = dma.vmem_to_hbm [thread:$0]  (%p498_p11), %s189_s29, 2048, %s191_s30, %s175_s2, %s436_s20, %s436_s20, %s437_s21  }
  0x3e PF: > { %s205_s22 = sand.u32 1, %s419_s6   ;;  %p626_p7 = scmp.ge.s32.totalorder %s431_s9, 2 }
  0x3f   : > { %s206_s23 = scalar_lea.sflag [#allocation4], %s205_s22 }
  0x40   : > { %p293_p5 = pnand %p626_p7, %p502_p12 }
  0x42   : > { %p294_p8 = pneg %p293_p5 }
  0x44   : > { %414 = dma.done.wait (%p294_p8), %s206_s23, 2048  }
  0x45   : > { %416 = vsyncadd (%p294_p8), %s206_s23, 4294965248  ;;  %p14_p10 = scmp.ge.s32.totalorder %s473_s12, 4   ;;  %s627_s6 = smov %s423_s7 }
  0x46   : > { %s628_s7 = smov %s427_s8  ;;  %s629_s8 = smov %s485_s15 }
  0x47   : > { %s630_s9 = smov %s473_s12  ;;  %16 = sbr.rel (!%p14_p10) target bundleno = 5 (0x5), region = 69 }
  0x4c   :  { %212 = vsyncpa [#allocation3], 1 }
  0x4d   :  { %214 = vsyncpa [#allocation3 + $0x1], 1 }
  0x4e   :  { %215 = vsyncpa [#allocation4], 1 }
  0x4f   :  { %217 = vsyncpa [#allocation4 + $0x1], 1 }

</bundles_post_ra>
